<compile_context>
chip_gen: v7x
topology: tpu7x:2x2x1
jax: 0.10.0
libtpu: 0.0.40
codegen_flags: <defaults>
</compile_context>

<pallas_src>
import functools
import math

import jax
import jax.numpy as jnp
from jax.experimental import pallas as pl
from jax.experimental.pallas import tpu as pltpu


_BLOCK_BYTES = 2 * 1024 * 1024        # per-block budget (f32-equivalent bytes)
_VMEM_LIMIT = 32 * 1024 * 1024        # safe on v5e/v6e (128 MiB) and v7x (64 MiB)


def _accurate_recip(s):
    # Approximate reciprocal on the EUP slot + one Newton step (VPU) -> ~f32
    # accuracy without a full-precision divide on the VALU.
    r = pl.reciprocal(s, approx=True)
    return r * (2.0 - s * r)


def _lane_softmax_kernel(x_ref, o_ref):
    # x_ref/o_ref: (TILE_R, C) block in VMEM; reduce over lanes (last axis).
    x = x_ref[...].astype(jnp.float32)
    m = jnp.max(x, axis=-1, keepdims=True)
    e = jnp.exp(x - m)
    s = jnp.sum(e, axis=-1, keepdims=True)
    o_ref[...] = (e * _accurate_recip(s)).astype(o_ref.dtype)


def _sublane_softmax_kernel(x_ref, o_ref):
    # x_ref/o_ref: (TILE_B, C, TILE_L) block; reduce over sublanes (axis=1),
    # spatial axis stays lane-dense.
    x = x_ref[...].astype(jnp.float32)
    m = jnp.max(x, axis=1, keepdims=True)
    e = jnp.exp(x - m)
    s = jnp.sum(e, axis=1, keepdims=True)
    o_ref[...] = (e * _accurate_recip(s)).astype(o_ref.dtype)


def _pick_tile(n: int, align: int, max_tile: int) -> int:
    """Largest divisor of n that is a multiple of `align` and <= max_tile.

    Falls back to n (full extent, always legal for a BlockSpec dim)."""
    best = 0
    d = 1
    while d * d <= n:
        if n % d == 0:
            for t in (d, n // d):
                if t % align == 0 and t <= max_tile and t > best:
                    best = t
        d += 1
    return best if best > 0 else n


def _default_softmax_dim(ndim: int) -> int:
    # Mirrors torch.nn.functional._get_softmax_dim behavior.
    return 0 if ndim in (0, 1, 3) else 1


def _softmax_lanes(x2d):
    R, C = x2d.shape
    itemsize = jnp.dtype(x2d.dtype).itemsize
    sub_align = max(8, 32 // itemsize)            # 8 (f32) / 16 (bf16) / 32 (i8,fp8)
    elem_budget = _BLOCK_BYTES // 4
    max_r = max(sub_align, elem_budget // max(C, 1))
    if R >= 2 * sub_align:
        # keep at least 2 grid steps so v7x's two TensorCores both get work
        max_r = min(max_r, max(sub_align, R // 2))
    tile_r = _pick_tile(R, sub_align, max_r)

    return pl.pallas_call(
        _lane_softmax_kernel,
        out_shape=jax.ShapeDtypeStruct((R, C), x2d.dtype),
        grid_spec=pltpu.PrefetchScalarGridSpec(
            num_scalar_prefetch=0,
            grid=(R // tile_r,),
            in_specs=[pl.BlockSpec((tile_r, C), lambda i: (i, 0))],
            out_specs=pl.BlockSpec((tile_r, C), lambda i: (i, 0)),
        ),
        compiler_params=pltpu.CompilerParams(
            dimension_semantics=("parallel",),
            vmem_limit_bytes=_VMEM_LIMIT,
        ),
    )(x2d)


def _softmax_sublanes(x3d):
    B, C, L = x3d.shape
    elem_budget = _BLOCK_BYTES // 4

    # Lane tile: keep it a multiple of 128 whenever L allows; otherwise take
    # the full (padded-and-masked) extent.
    if L % 128 == 0:
        max_l = max(128, elem_budget // max(C, 1))
        tile_l = _pick_tile(L, 128, max_l)
    else:
        tile_l = L

    # Batch tile: only grow it if the whole lane axis already fits one block.
    if tile_l == L and B > 1:
        max_b = max(1, elem_budget // max(C * tile_l, 1))
        max_b = min(max_b, max(1, B // 2))        # >=2 grid steps when possible
        tile_b = _pick_tile(B, 1, max_b)
    else:
        tile_b = 1

    return pl.pallas_call(
        _sublane_softmax_kernel,
        out_shape=jax.ShapeDtypeStruct((B, C, L), x3d.dtype),
        grid_spec=pltpu.PrefetchScalarGridSpec(
            num_scalar_prefetch=0,
            grid=(B // tile_b, L // tile_l),
            in_specs=[pl.BlockSpec((tile_b, C, tile_l), lambda b, l: (b, 0, l))],
            out_specs=pl.BlockSpec((tile_b, C, tile_l), lambda b, l: (b, 0, l)),
        ),
        compiler_params=pltpu.CompilerParams(
            dimension_semantics=("parallel", "parallel"),
            vmem_limit_bytes=_VMEM_LIMIT,
        ),
    )(x3d)


@functools.partial(jax.jit, static_argnames=("dim",))
def c_softmax(x: jax.Array, dim=None) -> jax.Array:
    ndim = x.ndim
    if ndim == 0:
        return jnp.ones_like(x)
    if dim is None:
        dim = _default_softmax_dim(ndim)
    dim = dim % ndim
    shape = x.shape

    if dim == ndim - 1:
        # Softmax over the last (lane) axis: flatten leading dims into rows.
        C = shape[-1]
        R = math.prod(shape[:-1]) if ndim > 1 else 1
        out2d = _softmax_lanes(x.reshape(R, C))
        return out2d.reshape(shape)

    # Softmax over a non-last axis: native layout, reduce over sublanes.
    B = math.prod(shape[:dim])
    C = shape[dim]
    L = math.prod(shape[dim + 1:])
    out3d = _softmax_sublanes(x.reshape(B, C, L))
    return out3d.reshape(shape)


class CSoftmax:
    """JAX/Pallas equivalent of the PyTorch CSoftmax module."""

    def __init__(self, dim=None):
        self.dim = dim

    def __call__(self, x):
        return c_softmax(x, dim=self.dim)


if __name__ == "__main__":
    key = jax.random.PRNGKey(0)
    # NCHW input, softmax over channel dim (matches torch default-dim rule for 4-D).
    x = jax.random.normal(key, (2, 4, 16, 16), dtype=jnp.float32)

    # Non-last-dim path (sublane reduction, lane-dense spatial axis).
    mod = CSoftmax(dim=1)
    y = jax.block_until_ready(mod(x))
    y_ref = jax.nn.softmax(x, axis=1)
    assert y.shape == x.shape and y.dtype == x.dtype
    assert jnp.allclose(y, y_ref, atol=1e-4, rtol=1e-4)
    assert jnp.allclose(jnp.sum(y, axis=1), jnp.ones((2, 16, 16)), atol=1e-4)

    # Last-dim path (lane reduction).
    y2 = jax.block_until_ready(c_softmax(x, dim=-1))
    y2_ref = jax.nn.softmax(x, axis=-1)
    assert jnp.allclose(y2, y2_ref, atol=1e-4, rtol=1e-4)

    print("KERNEL_OK")
</pallas_src>

<mosaic_0001>
module attributes {stable_mosaic.version = 11 : i64} {
  func.func @_sublane_softmax_kernel(%arg0: i32, %arg1: i32, %arg2: memref<1x4x256xf32, #tpu.memory_space<vmem>>, %arg3: memref<1x4x256xf32, #tpu.memory_space<vmem>>) attributes {dimension_semantics = [#tpu.dimension_semantics<parallel>, #tpu.dimension_semantics<parallel>], iteration_bounds = array<i64: 2, 1>, scalar_prefetch = 0 : i64, scratch_operands = 0 : i64, tpu.core_type = #tpu.core_type<tc>, window_params = [{transform_indices = @transform_0, window_bounds = array<i64: 1, 4, 256>}, {transform_indices = @transform_1, window_bounds = array<i64: 1, 4, 256>}]} {
    %c0 = arith.constant 0 : index
    %c0_0 = arith.constant 0 : index
    %c0_1 = arith.constant 0 : index
    %0 = vector.load %arg2[%c0, %c0_0, %c0_1] : memref<1x4x256xf32, #tpu.memory_space<vmem>>, vector<1x4x256xf32>
    %cst = arith.constant dense<0xFF800000> : vector<1x256xf32>
    %1 = vector.multi_reduction <maximumf>, %0, %cst [1] : vector<1x4x256xf32> to vector<1x256xf32>
    %2 = vector.shape_cast %1 : vector<1x256xf32> to vector<1x1x256xf32>
    %3 = vector.broadcast %2 : vector<1x1x256xf32> to vector<1x4x256xf32>
    %4 = arith.subf %0, %3 : vector<1x4x256xf32>
    %5 = math.exp %4 : vector<1x4x256xf32>
    %cst_2 = arith.constant dense<0.000000e+00> : vector<1x256xf32>
    %6 = vector.multi_reduction <add>, %5, %cst_2 [1] : vector<1x4x256xf32> to vector<1x256xf32>
    %7 = vector.shape_cast %6 : vector<1x256xf32> to vector<1x1x256xf32>
    %8 = tpu.reciprocal %7 {approx = true} : vector<1x1x256xf32> -> vector<1x1x256xf32>
    %9 = arith.mulf %7, %8 : vector<1x1x256xf32>
    %cst_3 = arith.constant 2.000000e+00 : f32
    %10 = vector.broadcast %cst_3 : f32 to vector<1x1x256xf32>
    %11 = arith.subf %10, %9 : vector<1x1x256xf32>
    %12 = arith.mulf %8, %11 : vector<1x1x256xf32>
    %13 = vector.broadcast %12 : vector<1x1x256xf32> to vector<1x4x256xf32>
    %14 = arith.mulf %5, %13 : vector<1x4x256xf32>
    %c0_4 = arith.constant 0 : index
    %c0_5 = arith.constant 0 : index
    %c0_6 = arith.constant 0 : index
    %15 = vector.load %arg3[%c0_4, %c0_5, %c0_6] : memref<1x4x256xf32, #tpu.memory_space<vmem>>, vector<1x4x256xf32>
    tpu.vector_store %arg3[%c0_4, %c0_5, %c0_6], %14 {strides = array<i32>} : memref<1x4x256xf32, #tpu.memory_space<vmem>>, vector<1x4x256xf32>,
    return
  }
  func.func @transform_0(%arg0: i32, %arg1: i32) -> (i32, i32, i32) {
    %c0_i32 = arith.constant 0 : i32
    %c0_i32_0 = arith.constant 0 : i32
    return %arg0, %c0_i32, %arg1 : i32, i32, i32
  }
  func.func @transform_1(%arg0: i32, %arg1: i32) -> (i32, i32, i32) {
    %c0_i32 = arith.constant 0 : i32
    %c0_i32_0 = arith.constant 0 : i32
    return %arg0, %c0_i32, %arg1 : i32, i32, i32
  }
}

</mosaic_0001>

<bundles_post_ra>
// kernel: c_softmax.1
= control target key start
LH: loop header
LB: loop body
LE: loop exit
PB: predicated region body
PF: predicated region fallthrough
CT: control target
= control target key end

     0   :  { %s378_s6 = smov 0   ;;  %s380_s7 = smov 0   ;;  %s422_s0 = inlined_call_operand.vmem [shape: f32[2,4,256], index: 0, kind: input, shape index: {}]   ;;  %s423_s1 = inlined_call_operand.vmem [shape: f32[2,4,256], index: 1, kind: output, shape index: {}]  }
   0x1   :  { %s382_s8 = smov 0  }
   0x2 LB: > { %s23_s9 = sadd.s32 1, %s362_s7  ;;  %p304_p0 = scmp.ge.s32.totalorder %s366_s8, 1  ;;  %s366_s8 = sphi %s382_s8, %s11_s8   ;;  %s362_s7 = sphi %s380_s7, %s425_s7   ;;  %s358_s6 = sphi %s378_s6, %s424_s6  }
   0x3   : > { %p25_p1 = scmp.ge.s32.totalorder %s23_s9, 2  ;;  %p108_p2 = scmp.lt.s32.totalorder %s366_s8, 3 }
   0x5   : > { %s427_s9 = smov (%p25_p1, %s23_s9), 0  ;;  %p109_p3 = pnand %p304_p0, %p108_p2 }
   0x6   : > { %p137_p4 = scmp.lt.s32.totalorder (!%p109_p3), %s358_s6, 1  ;;  %vm160_vm0 = vcmask (!%p109_p3), 1043456  }
   0x7   : > { %112 = sbr.rel (%p109_p3) target bundleno = 87 (0x57), region = 24 }
   0xe   : > { %s429_s6 = smov (!%p137_p4, %s358_s6), 1 }
   0xf   : > { %s311_s10 = sshll.u32 %s429_s6, 3 }
  0x10   : > { %s144_s13 = scalar_lea.vmem %s422_s0, %s311_s10  ;;  %s154_s16 = scalar_lea.vmem %s423_s1, %s311_s10 }
  0x11   : > { %v156_v0 = vld [vmem:[%s144_s13] sm:$0xff] }
  0x12   : > { %v158_v1 = vcombine.high %v156_v0, %v156_v0  ;;  %v161_v2 = vsel %vm160_vm0, %v156_v0, -inf }
  0x13   : > { %v162_v3 = vrot.slane %v161_v2, 4 }
  0x14   : > { %v168_v4 = vsel %vm160_vm0, %v158_v1, -inf }
  0x15   : > { %v163_v5 = vmax.f32 %v161_v2, %v162_v3  ;;  %v169_v6 = vrot.slane %v168_v4, 4 }
  0x17   : > { %v164_v7 = vrot.slane %v163_v5, 2  ;;  %v170_v8 = vmax.f32 %v168_v4, %v169_v6 }
  0x19   : > { %v165_v9 = vmax.f32 %v163_v5, %v164_v7  ;;  %v171_v10 = vrot.slane %v170_v8, 2 }
  0x1b   : > { %v166_v11 = vrot.slane %v165_v9, 1  ;;  %v172_v12 = vmax.f32 %v170_v8, %v171_v10 }
  0x1d   : > { %v167_v13 = vmax.f32 %v165_v9, %v166_v11  ;;  %v173_v14 = vrot.slane %v172_v12, 1 }
  0x1f   : > { %v174_v15 = vmax.f32 %v172_v12, %v173_v14 }
  0x21   : > { %v177_v16 = vcombine.low %v167_v13, %v174_v15 }
  0x23   : > { %v179_v17 = vsub.f32 %v156_v0, %v177_v16 }
  0x25   : > { %v180_v18 = vmul.f32 1.442695, %v179_v17 }
  0x27   : > { %338 = vpow2.f32 %v180_v18 }
  0x31   : > { %v339_v19 = vpop.eup %338 }
  0x32   : > { %v183_v20 = vcombine.high %v339_v19, %v339_v19  ;;  %v185_v21 = vsel %vm160_vm0, %v339_v19, 0.0 }
  0x33   : > { %v186_v22 = vrot.slane %v185_v21, 4 }
  0x34   : > { %v192_v23 = vsel %vm160_vm0, %v183_v20, 0.0 }
  0x35   : > { %v187_v24 = vadd.f32 %v186_v22, %v185_v21  ;;  %v193_v25 = vrot.slane %v192_v23, 4 }
  0x37   : > { %v188_v26 = vrot.slane %v187_v24, 2  ;;  %v194_v27 = vadd.f32 %v193_v25, %v192_v23 }
  0x39   : > { %v189_v28 = vadd.f32 %v188_v26, %v187_v24  ;;  %v195_v29 = vrot.slane %v194_v27, 2 }
  0x3b   : > { %v190_v30 = vrot.slane %v189_v28, 1  ;;  %v196_v31 = vadd.f32 %v195_v29, %v194_v27 }
  0x3d   : > { %v191_v32 = vadd.f32 %v190_v30, %v189_v28  ;;  %v197_v33 = vrot.slane %v196_v31, 1 }
  0x3f   : > { %v198_v34 = vadd.f32 %v197_v33, %v196_v31  ;;  %340 = vrcp.f32 %v191_v32 }
  0x41   : > { %342 = vrcp.f32 %v198_v34 }
  0x49   : > { %v341_v35 = vpop.eup %340 }
  0x4a   : > { %v201_v36 = vmul.f32 %v341_v35, %v191_v32 }
  0x4b   : > { %v343_v37 = vpop.eup %342 }
  0x4c   : > { %v202_v38 = vmul.f32 %v343_v37, %v198_v34  ;;  %v203_v39 = vsub.f32 2.0, %v201_v36 }
  0x4e   : > { %v204_v40 = vsub.f32 2.0, %v202_v38  ;;  %v205_v41 = vmul.f32 %v341_v35, %v203_v39 }
  0x50   : > { %v206_v42 = vmul.f32 %v343_v37, %v204_v40 }
  0x52   : > { %v209_v43 = vcombine.low %v205_v41, %v206_v42 }
  0x54   : > { %v211_v44 = vmul.f32 %v339_v19, %v209_v43 }
  0x56   : > { %212 = vst [vmem:[%s154_s16] sm:$0xff] %v211_v44 }
  0x57 PF: > { %s11_s8 = sadd.s32 1, %s366_s8   ;;  %s424_s6 = smov %s362_s7 }
  0x58   : > { %p8_p5 = scmp.ge.s32.totalorder %s11_s8, 4   ;;  %s425_s7 = smov %s427_s9 }
  0x5a   :  { %10 = sbr.rel (!%p8_p5) target bundleno = 2 (0x2), region = 54 }

</bundles_post_ra>
